<compile_context>
chip_gen: v7x
topology: tpu7x:2x2x1
jax: 0.10.0
libtpu: 0.0.40
codegen_flags: <defaults>
</compile_context>

<pallas_src>
import math
import functools

import jax
import jax.numpy as jnp
from jax.experimental import pallas as pl
from jax.experimental.pallas import tpu as pltpu


def _round_up(x, m):
    return (x + m - 1) // m * m


def _mfm_conv_kernel(x_ref, w_ref, b_ref, o_ref, im2col_ref, *, S, L, cp, oc):
    # x_ref     : (1, cp, Lin)    zero-padded image, spatial flattened, row stride S
    # w_ref     : (2*oc, 9*cp)    fused lane-dense weights (resident)
    # b_ref     : (2*oc, 1)       bias for both conv halves (resident, f32)
    # o_ref     : (1, oc, L)      output row tile, L = TH*S (multiple of 128)
    # im2col_ref: (9*cp, L)       VMEM scratch: stacked shifted-input tile
    t = pl.program_id(1)
    q0 = pl.multiple_of(t * L, 128)          # first output lane of this tile (aligned)

    # One aligned dynamic window load covering all 9 tap shifts for this tile.
    win = L + 3 * S                          # q0 + win <= Lin by construction
    xwin = x_ref[0, :, pl.ds(q0, win)]       # (cp, win)

    # Build the stacked operand once per tile: tap (kh, kw) occupies sublane
    # rows [(kh*3+kw)*cp, +cp) and is the window shifted by kh*S + kw lanes.
    for kh in range(3):
        for kw in range(3):
            t9 = kh * 3 + kw
            off = kh * S + kw
            im2col_ref[t9 * cp:(t9 + 1) * cp, :] = xwin[:, off:off + L]

    # Single fused matmul (K = 9*cp), f32 accumulation; then bias + max halves.
    acc = jnp.dot(w_ref[...], im2col_ref[...], preferred_element_type=jnp.float32)
    acc = acc + b_ref[...]                   # (2*oc, 1) broadcasts over L lanes
    o_ref[0] = jnp.maximum(acc[:oc], acc[oc:]).astype(o_ref.dtype)


def mfm_forward(x_nchw, weight, bias, out_channels, compute_dtype=None):
    """MFM conv forward.  x: (N,C,H,W), weight: (2*oc, C, 3, 3), bias: (2*oc,)."""
    n, c, h, w = x_nchw.shape
    oc = out_channels
    assert weight.shape == (2 * oc, c, 3, 3)
    assert bias.shape == (2 * oc,)

    cp = _round_up(c, 8)                  # channels padded to a sublane tile
    S = _round_up(w + 2, 8)               # padded row stride (>= w + 2)
    g = 128 // math.gcd(S, 128)           # row-tile granularity so TH*S % 128 == 0

    # Rows per tile: multiple of g, large enough to be lane-dense / amortize the
    # per-step overhead, small enough that the (9*cp, L) im2col tile stays a few
    # MiB (comfortable double-buffered VMEM even on v7x's 64 MiB).
    max_lanes = max(512, min(8192, (4 * 1024 * 1024) // (9 * cp * 4)))
    th = max(g, (max_lanes // S) // g * g)
    th = min(th, _round_up(h, g))
    h_pad = _round_up(h, th)
    num_tiles = h_pad // th
    L = th * S                            # output lanes per tile
    Lin = (h_pad + 3) * S                 # flattened padded image length
    assert L % 128 == 0

    # ONE pad: channels c->cp, rows (1 top, h_pad-h+2 bottom), cols (1 left,
    # S-w-1 right).  The flatten below is a contiguous (free) reshape.
    xp = jnp.pad(x_nchw, ((0, 0), (0, cp - c), (1, h_pad - h + 2), (1, S - w - 1)))
    xflat = xp.reshape(n, cp, Lin)

    # Fused lane-dense weights: (2oc, C, 3, 3) -> (2oc, 3, 3, cp) -> (2oc, 9*cp)
    # with column index = (kh*3 + kw)*cp + c, matching the im2col row order.
    wp = jnp.pad(weight, ((0, 0), (0, cp - c), (0, 0), (0, 0)))
    w_fused = jnp.transpose(wp, (0, 2, 3, 1)).reshape(2 * oc, 9 * cp)
    b2 = bias.reshape(2 * oc, 1).astype(jnp.float32)

    cdt = jnp.float32 if compute_dtype is None else compute_dtype
    xflat = xflat.astype(cdt)
    w_fused = w_fused.astype(cdt)

    kernel = functools.partial(_mfm_conv_kernel, S=S, L=L, cp=cp, oc=oc)

    out = pl.pallas_call(
        kernel,
        out_shape=jax.ShapeDtypeStruct((n, oc, h_pad * S), x_nchw.dtype),
        grid_spec=pltpu.PrefetchScalarGridSpec(
            num_scalar_prefetch=0,
            grid=(n, num_tiles),
            in_specs=[
                # Padded image: resident across the row-tile axis (DMA once / image).
                pl.BlockSpec((1, cp, Lin), lambda b, t: (b, 0, 0)),
                # Fused weights + bias: resident across the whole grid.
                pl.BlockSpec((2 * oc, 9 * cp), lambda b, t: (0, 0)),
                pl.BlockSpec((2 * oc, 1), lambda b, t: (0, 0)),
            ],
            out_specs=pl.BlockSpec((1, oc, L), lambda b, t: (b, 0, t)),
            scratch_shapes=[pltpu.VMEM((9 * cp, L), cdt)],
        ),
        compiler_params=pltpu.CompilerParams(
            dimension_semantics=("parallel", "parallel"),
            vmem_limit_bytes=48 * 1024 * 1024),
    )(xflat, w_fused, b2)

    # (N, oc, h_pad*S) -> (N, oc, h_pad, S) -> drop pad rows/cols -> NCHW output.
    return out.reshape(n, oc, h_pad, S)[:, :, :h, :w]


def _reference(x_nchw, weight, bias, out_channels):
    y = jax.lax.conv_general_dilated(
        x_nchw, weight, window_strides=(1, 1), padding=((1, 1), (1, 1)),
        dimension_numbers=("NCHW", "OIHW", "NCHW"))
    y = y + bias.reshape(1, -1, 1, 1)
    return jnp.maximum(y[:, :out_channels], y[:, out_channels:])


if __name__ == "__main__":
    # Small shapes consistent with the module: batch=2, in_channels=4,
    # out_channels=8, spatial 16x16.
    N, Cin, H, W = 2, 4, 16, 16
    OC = 8

    key = jax.random.PRNGKey(0)
    kx, kw_, kb = jax.random.split(key, 3)
    x = jax.random.normal(kx, (N, Cin, H, W), dtype=jnp.float32)

    # Deterministic parameter init (kaiming-uniform-like, as nn.Conv2d default).
    fan_in = Cin * 3 * 3
    bound = 1.0 / math.sqrt(fan_in)
    weight = jax.random.uniform(kw_, (2 * OC, Cin, 3, 3),
                                minval=-bound, maxval=bound, dtype=jnp.float32)
    bias = jax.random.uniform(kb, (2 * OC,),
                              minval=-bound, maxval=bound, dtype=jnp.float32)

    out = mfm_forward(x, weight, bias, OC)
    out = jax.block_until_ready(out)

    ref = _reference(x, weight, bias, OC)
    assert out.shape == (N, OC, H, W)
    assert jnp.allclose(out, ref, atol=1e-4, rtol=1e-4), "mismatch vs conv reference"

    print("KERNEL_OK")
</pallas_src>

<mosaic_0001>
module attributes {stable_mosaic.version = 11 : i64} {
  func.func @_mfm_conv_kernel(%arg0: i32, %arg1: i32, %arg2: memref<1x8x456xf32, #tpu.memory_space<vmem>>, %arg3: memref<16x72xf32, #tpu.memory_space<vmem>>, %arg4: memref<16x1xf32, #tpu.memory_space<vmem>>, %arg5: memref<1x8x384xf32, #tpu.memory_space<vmem>>, %arg6: memref<72x384xf32, #tpu.memory_space<vmem>>) attributes {dimension_semantics = [#tpu.dimension_semantics<parallel>, #tpu.dimension_semantics<parallel>], iteration_bounds = array<i64: 2, 1>, scalar_prefetch = 0 : i64, scratch_operands = 1 : i64, tpu.core_type = #tpu.core_type<tc>, window_params = [{transform_indices = @transform_0, window_bounds = array<i64: 1, 8, 456>}, {pipeline_mode = #tpu.pipeline_mode<synchronous>, transform_indices = @transform_1, window_bounds = array<i64: 16, 72>}, {pipeline_mode = #tpu.pipeline_mode<synchronous>, transform_indices = @transform_2, window_bounds = array<i64: 16, 1>}, {transform_indices = @transform_3, window_bounds = array<i64: 1, 8, 384>}]} {
    %c384_i32 = arith.constant 384 : i32
    %0 = arith.muli %arg1, %c384_i32 : i32
    %1 = tpu.assume_multiple %0, 128 : i32
    %c0 = arith.constant 0 : index
    %c0_0 = arith.constant 0 : index
    %2 = arith.index_cast %1 : i32 to index
    %3 = vector.load %arg2[%c0, %c0_0, %2] : memref<1x8x456xf32, #tpu.memory_space<vmem>>, vector<1x8x456xf32>
    %4 = vector.shape_cast %3 : vector<1x8x456xf32> to vector<8x456xf32>
    %5 = vector.extract_strided_slice %4 {offsets = [0, 0], sizes = [8, 384], strides = [1, 1]} : vector<8x456xf32> to vector<8x384xf32>
    %c0_1 = arith.constant 0 : index
    %c0_2 = arith.constant 0 : index
    %6 = vector.load %arg6[%c0_1, %c0_2] : memref<72x384xf32, #tpu.memory_space<vmem>>, vector<8x384xf32>
    tpu.vector_store %arg6[%c0_1, %c0_2], %5 {strides = array<i32>} : memref<72x384xf32, #tpu.memory_space<vmem>>, vector<8x384xf32>,
    %7 = vector.extract_strided_slice %4 {offsets = [0, 1], sizes = [8, 384], strides = [1, 1]} : vector<8x456xf32> to vector<8x384xf32>
    %c8 = arith.constant 8 : index
    %c0_3 = arith.constant 0 : index
    %8 = vector.load %arg6[%c8, %c0_3] : memref<72x384xf32, #tpu.memory_space<vmem>>, vector<8x384xf32>
    tpu.vector_store %arg6[%c8, %c0_3], %7 {strides = array<i32>} : memref<72x384xf32, #tpu.memory_space<vmem>>, vector<8x384xf32>,
    %9 = vector.extract_strided_slice %4 {offsets = [0, 2], sizes = [8, 384], strides = [1, 1]} : vector<8x456xf32> to vector<8x384xf32>
    %c16 = arith.constant 16 : index
    %c0_4 = arith.constant 0 : index
    %10 = vector.load %arg6[%c16, %c0_4] : memref<72x384xf32, #tpu.memory_space<vmem>>, vector<8x384xf32>
    tpu.vector_store %arg6[%c16, %c0_4], %9 {strides = array<i32>} : memref<72x384xf32, #tpu.memory_space<vmem>>, vector<8x384xf32>,
    %11 = vector.extract_strided_slice %4 {offsets = [0, 24], sizes = [8, 384], strides = [1, 1]} : vector<8x456xf32> to vector<8x384xf32>
    %c24 = arith.constant 24 : index
    %c0_5 = arith.constant 0 : index
    %12 = vector.load %arg6[%c24, %c0_5] : memref<72x384xf32, #tpu.memory_space<vmem>>, vector<8x384xf32>
    tpu.vector_store %arg6[%c24, %c0_5], %11 {strides = array<i32>} : memref<72x384xf32, #tpu.memory_space<vmem>>, vector<8x384xf32>,
    %13 = vector.extract_strided_slice %4 {offsets = [0, 25], sizes = [8, 384], strides = [1, 1]} : vector<8x456xf32> to vector<8x384xf32>
    %c32 = arith.constant 32 : index
    %c0_6 = arith.constant 0 : index
    %14 = vector.load %arg6[%c32, %c0_6] : memref<72x384xf32, #tpu.memory_space<vmem>>, vector<8x384xf32>
    tpu.vector_store %arg6[%c32, %c0_6], %13 {strides = array<i32>} : memref<72x384xf32, #tpu.memory_space<vmem>>, vector<8x384xf32>,
    %15 = vector.extract_strided_slice %4 {offsets = [0, 26], sizes = [8, 384], strides = [1, 1]} : vector<8x456xf32> to vector<8x384xf32>
    %c40 = arith.constant 40 : index
    %c0_7 = arith.constant 0 : index
    %16 = vector.load %arg6[%c40, %c0_7] : memref<72x384xf32, #tpu.memory_space<vmem>>, vector<8x384xf32>
    tpu.vector_store %arg6[%c40, %c0_7], %15 {strides = array<i32>} : memref<72x384xf32, #tpu.memory_space<vmem>>, vector<8x384xf32>,
    %17 = vector.extract_strided_slice %4 {offsets = [0, 48], sizes = [8, 384], strides = [1, 1]} : vector<8x456xf32> to vector<8x384xf32>
    %c48 = arith.constant 48 : index
    %c0_8 = arith.constant 0 : index
    %18 = vector.load %arg6[%c48, %c0_8] : memref<72x384xf32, #tpu.memory_space<vmem>>, vector<8x384xf32>
    tpu.vector_store %arg6[%c48, %c0_8], %17 {strides = array<i32>} : memref<72x384xf32, #tpu.memory_space<vmem>>, vector<8x384xf32>,
    %19 = vector.extract_strided_slice %4 {offsets = [0, 49], sizes = [8, 384], strides = [1, 1]} : vector<8x456xf32> to vector<8x384xf32>
    %c56 = arith.constant 56 : index
    %c0_9 = arith.constant 0 : index
    %20 = vector.load %arg6[%c56, %c0_9] : memref<72x384xf32, #tpu.memory_space<vmem>>, vector<8x384xf32>
    tpu.vector_store %arg6[%c56, %c0_9], %19 {strides = array<i32>} : memref<72x384xf32, #tpu.memory_space<vmem>>, vector<8x384xf32>,
    %21 = vector.extract_strided_slice %4 {offsets = [0, 50], sizes = [8, 384], strides = [1, 1]} : vector<8x456xf32> to vector<8x384xf32>
    %c64 = arith.constant 64 : index
    %c0_10 = arith.constant 0 : index
    %22 = vector.load %arg6[%c64, %c0_10] : memref<72x384xf32, #tpu.memory_space<vmem>>, vector<8x384xf32>
    tpu.vector_store %arg6[%c64, %c0_10], %21 {strides = array<i32>} : memref<72x384xf32, #tpu.memory_space<vmem>>, vector<8x384xf32>,
    %c0_11 = arith.constant 0 : index
    %c0_12 = arith.constant 0 : index
    %23 = vector.load %arg3[%c0_11, %c0_12] : memref<16x72xf32, #tpu.memory_space<vmem>>, vector<16x72xf32>
    %c0_13 = arith.constant 0 : index
    %c0_14 = arith.constant 0 : index
    %24 = vector.load %arg6[%c0_13, %c0_14] : memref<72x384xf32, #tpu.memory_space<vmem>>, vector<72x384xf32>
    %cst = arith.constant dense<0.000000e+00> : vector<16x384xf32>
    %25 = tpu.matmul %23, %24, %cst {dimension_numbers = #tpu.dot_dimension_numbers<[1], [0], [0], [1], [0, 0, 1, 1], [], []>} : vector<16x72xf32>, vector<72x384xf32>, vector<16x384xf32> -> vector<16x384xf32>
    %c0_15 = arith.constant 0 : index
    %c0_16 = arith.constant 0 : index
    %26 = vector.load %arg4[%c0_15, %c0_16] : memref<16x1xf32, #tpu.memory_space<vmem>>, vector<16x1xf32>
    %27 = vector.broadcast %26 : vector<16x1xf32> to vector<16x384xf32>
    %28 = arith.addf %25, %27 : vector<16x384xf32>
    %29 = vector.extract_strided_slice %28 {offsets = [0, 0], sizes = [8, 384], strides = [1, 1]} : vector<16x384xf32> to vector<8x384xf32>
    %30 = vector.extract_strided_slice %28 {offsets = [8, 0], sizes = [8, 384], strides = [1, 1]} : vector<16x384xf32> to vector<8x384xf32>
    %31 = arith.maximumf %29, %30 : vector<8x384xf32>
    %c0_17 = arith.constant 0 : index
    %c0_18 = arith.constant 0 : index
    %c0_19 = arith.constant 0 : index
    %32 = vector.load %arg5[%c0_17, %c0_18, %c0_19] : memref<1x8x384xf32, #tpu.memory_space<vmem>>, vector<1x8x384xf32>
    %33 = vector.shape_cast %32 : vector<1x8x384xf32> to vector<8x384xf32>
    %34 = vector.shape_cast %31 : vector<8x384xf32> to vector<1x8x384xf32>
    tpu.vector_store %arg5[%c0_17, %c0_18, %c0_19], %34 {strides = array<i32>} : memref<1x8x384xf32, #tpu.memory_space<vmem>>, vector<1x8x384xf32>,
    return
  }
  func.func @transform_0(%arg0: i32, %arg1: i32) -> (i32, i32, i32) {
    %c0_i32 = arith.constant 0 : i32
    %c0_i32_0 = arith.constant 0 : i32
    %c0_i32_1 = arith.constant 0 : i32
    return %arg0, %c0_i32, %c0_i32_0 : i32, i32, i32
  }
  func.func @transform_1(%arg0: i32, %arg1: i32) -> (i32, i32) {
    %c0_i32 = arith.constant 0 : i32
    %c0_i32_0 = arith.constant 0 : i32
    %c0_i32_1 = arith.constant 0 : i32
    return %c0_i32, %c0_i32_0 : i32, i32
  }
  func.func @transform_2(%arg0: i32, %arg1: i32) -> (i32, i32) {
    %c0_i32 = arith.constant 0 : i32
    %c0_i32_0 = arith.constant 0 : i32
    %c0_i32_1 = arith.constant 0 : i32
    return %c0_i32, %c0_i32_0 : i32, i32
  }
  func.func @transform_3(%arg0: i32, %arg1: i32) -> (i32, i32, i32) {
    %c0_i32 = arith.constant 0 : i32
    %c0_i32_0 = arith.constant 0 : i32
    return %arg0, %c0_i32, %arg1 : i32, i32, i32
  }
}

</mosaic_0001>

<bundles_post_ra>
// kernel: tpu_custom_call.1
= control target key start
LH: loop header
LB: loop body
LE: loop exit
PB: predicated region body
PF: predicated region fallthrough
CT: control target
= control target key end

     0   :  { %8 = vsyncpa [#allocation4], 0  ;;  %s1270_s0 = inlined_call_operand.hbm [shape: f32[2,8,456], index: 0, kind: input, shape index: {}]   ;;  %s1271_s1 = inlined_call_operand.vmem [shape: f32[16,72], index: 1, kind: input, shape index: {}]   ;;  %s1272_s2 = inlined_call_operand.vmem [shape: f32[16,1], index: 2, kind: input, shape index: {}]   ;;  %s1273_s3 = inlined_call_operand.hbm [shape: f32[2,8,384], index: 3, kind: output, shape index: {}]  }
   0x1   :  { %10 = vsyncpa [#allocation4 + $0x1], 0 }
   0x2   :  { %11 = vsyncpa [#allocation5], 0 }
   0x3   :  { %13 = vsyncpa [#allocation5 + $0x1], 0  ;;  %s1041_s12 = smov 0   ;;  %s1043_s13 = smov 0  }
   0x4   :  { %s1045_s14 = smov 0   ;;  %s1047_s15 = smov 0  }
   0x5   :  { %s1049_s16 = smov 0   ;;  %s1051_s17 = smov 0  }
   0x6 LB: > { %s668_s18 = sadd.s32 4294967295, %s1007_s17   ;;  %s669_s19 = sadd.s32 4294967294, %s1007_s17   ;;  %s1007_s17 = sphi %s1051_s17, %s19_s17   ;;  %s1003_s16 = sphi %s1049_s16, %s1289_s16   ;;  %s999_s15 = sphi %s1047_s15, %s1288_s15   ;;  %s995_s14 = sphi %s1045_s14, %s1287_s14   ;;  %s991_s13 = sphi %s1043_s13, %s1286_s13   ;;  %s987_s12 = sphi %s1041_s12, %s1285_s12  }
   0x7   : > { %s31_s20 = sadd.s32 1, %s1003_s16  ;;  %s38_s21 = sadd.s32 1, %s995_s14 }
   0x8   : > { %p33_p0 = scmp.ge.s32.totalorder %s31_s20, 2  ;;  %p45_p1 = scmp.ne.s32.totalorder %s995_s14, %s991_s13 }
   0x9   : > { %p46_p2 = scmp.eq.s32.totalorder %s1007_s17, 0  ;;  %p51_p3 = scmp.ne.s32.totalorder %s991_s13, %s987_s12 }
   0xa   : > { %s1291_s20 = smov (%p33_p0, %s31_s20), 0  ;;  %p52_p5 = scmp.eq.s32.totalorder %s668_s18, 0 }
   0xb   : > { %p1082_p4 = por %p46_p2, %p45_p1  ;;  %s35_s23 = ssub.s32 %s1003_s16, %s1291_s20 }
   0xc   : > { %p119_p6 = scmp.eq.s32.totalorder %s668_s18, 1  ;;  %p36_p7 = scmp.eq.s32.totalorder %s35_s23, 0 }
   0xd   : > { %p1088_p8 = por %p52_p5, %p51_p3  ;;  %p125_p10 = scmp.eq.s32.totalorder %s669_s19, 1 }
   0xe   : > { %p1092_p9 = por %p119_p6, %p45_p1  ;;  %p763_p13 = scmp.lt.s32.totalorder %s1007_s17, 2 }
   0xf   : > { %s1097_s26 = scalar_select %p36_p7, %s995_s14, %s38_s21  }
  0x10   : > { %s1277_s25 = scalar_select %p1092_p9, 1, 0 }
  0x11   : > { %p1099_p11 = por %p125_p10, %p51_p3  ;;  %s151_s28 = sand.u32 1, %s995_s14  }
  0x12   : > { %s672_s29 = sshll.u32 %s151_s28, 5  ;;  %s684_s30 = sshll.u32 %s1003_s16, 9 }
  0x13   : > { %s1278_s27 = scalar_select %p1099_p11, 1, 0 }
  0x14   : > { %s1110_s6 = scalar_lea.hbm %s1270_s0, %s684_s30  ;;  %s155_s7 = scalar_lea.vmem [#allocation3], %s672_s29 }
  0x15   : > { %s163_s8 = sshll.u32 %s155_s7, 4  ;;  %p1116_p0 = pnand %p763_p13, %p1082_p4  ;;  %s1112_s8 = int_to_ptr.vmem [resolvable:$true] %s163_s8 }
  0x16   : > { %s152_s10 = scalar_lea.sflag [#allocation4], %s151_s28  ;;  %s895_s11 = scalar_lea.hbm %s1110_s6, 512 }
  0x17   : > { %p896_p3 = scmp.ne.s32.totalorder %s1110_s6, %s895_s11  ;;  %p897_p5 = pneg %p1116_p0 }
  0x18   : > { %s900_s21 = scalar_lea.hbm %s1270_s0, 1024  ;;  %p901_p4 = scmp.lt.u32.totalorder %s1110_s6, %s1270_s0 }
  0x19   : > { %p898_p6 = pnand %p897_p5, %p896_p3  ;;  %p902_p10 = scmp.lt.u32.totalorder %s900_s21, %s895_s11 }
  0x1a   : > { %p904_p12 = scmp.lt.u32.totalorder %s895_s11, %s1110_s6 }
  0x1b   : > { %p899_p7 = pneg %p898_p6  ;;  %p903_p13 = por %p902_p10, %p901_p4 }
  0x1d   : > { %p905_p1 = por %p904_p12, %p903_p13 }
  0x1f   : > { %p906_p2 = pnand %p905_p1, %p899_p7 }
  0x21   : > { %909 = shalt.err (!%p906_p2)
}
  0x22   : > { %s910_s28 = scalar_lea.vmem %s1112_s8, 512  ;;  %s1009_s29 = smov [#allocation3]  }
  0x23   : > { %p911_p3 = scmp.ne.s32.totalorder %s1112_s8, %s910_s28  ;;  %s915_s30 = sshll.u32 %s1009_s29, 4  ;;  %s916_s30 = int_to_ptr.vmem [resolvable:$false] %s915_s30 }
  0x24   : > { %s917_s4 = scalar_lea.vmem %s916_s30, 1024  ;;  %p918_p9 = scmp.lt.s32.totalorder %s1112_s8, %s916_s30 }
  0x25   : > { %p913_p6 = pnand %p911_p3, %p897_p5  ;;  %p919_p4 = scmp.lt.s32.totalorder %s917_s4, %s910_s28 }
  0x27   : > { %p914_p11 = pneg %p913_p6  ;;  %p920_p10 = por %p919_p4, %p918_p9 }
  0x29   : > { %p921_p12 = pnand %p920_p10, %p914_p11 }
  0x2b   : > { %924 = shalt.err (!%p921_p12)
}
  0x2c   : > { %758 = dma.hbm_to_vmem [thread:$0]  (!%p1116_p0), %s1110_s6, 512, %s1112_s8, %s152_s10  }
  0x2d   : > { %p1280_p1 = scmp.lt.s32.totalorder %s1007_s17, 3  ;;  %p1281_p2 = scmp.ge.s32.totalorder %s1007_s17, 1 }
  0x2f   : > { %p169_p5 = pnand %p1281_p2, %p1280_p1 }
  0x30   : > { %s1152_s5 = sand.u32 (!%p169_p5), 1, %s991_s13  }
  0x31   : > { %172 = sbr.rel (%p169_p5) target bundleno = 444 (0x1bc), region = 32  ;;  %s676_s7 = sshll.u32 (!%p169_p5), %s1152_s5, 5 }
  0x32   : > { %s175_s11 = scalar_lea.sflag (!%p169_p5), [#allocation4], %s1152_s5  ;;  %s178_s18 = scalar_lea.vmem (!%p169_p5), [#allocation3], %s676_s7 }
  0x38   : > { %978 = dma.done.wait (%p1088_p8), %s175_s11, 512  }
  0x39   : > { %980 = vsyncadd (%p1088_p8), %s175_s11, 4294966784  ;;  %v208_v0 = vld [vmem:[%s178_s18 + $0x8] sm:$0xff]  ;;  %v1160_v1 = vld [vmem:[%s178_s18 + $0x10] sm:$0xff]  ;;  %s1010_s6 = smov 126   ;;  %s1011_s8 = smov 127   ;;  %vm403_vm0 = vcmask 588800  }
  0x3a   : > { %v1162_v2 = vld [vmem:[%s178_s18] sm:$0xff]  ;;  %v833_v3 = vpack.i.bf16 %v1160_v1, %v208_v0  ;;  %v210_v4 = vld [vmem:[%s178_s18 + $0x18] sm:$0xff]  ;;  %s1012_s9 = smov 104   ;;  %s1013_s24 = smov 102   ;;  %v1017_v7 = vmov 0.0   ;;  %v1018_v8 = vmov 0  }
  0x3b   : > { %v828_v5 = vpack.i.bf16 %v210_v4, %v1162_v2  ;;  %s1014_s10 = smov 103   ;;  %s1015_s19 = smov 79   ;;  %v1169_v6 = vld [vmem:[%s1271_s1] sm:$0xff]  ;;  %474 = vmatprep.mubr.f32.mxu0 %v1017_v7  ;;  %893 = vset.pattern.permute.xlu0 %v1018_v8  ;;  %v392_v10 = vld [vmem:[%s1272_s2 + $0x8] sm:$0xff]  ;;  %vm226_vm1 = vcmask 1039360   ;;  %vm244_vm2 = vcmask 1031168  }
  0x3c   : > { %834 = vrot.lane.b32.xlu1 %v833_v3, %s1010_s6  ;;  %824 = vrot.lane.b32.xlu0 %v833_v3, %s1011_s8  ;;  %s1016_s21 = smov 80   ;;  %s1019_s28 = smov 78   ;;  %v391_v9 = vld [vmem:[%s1272_s2] sm:$0xff]  ;;  %vm262_vm3 = vcmask 850944   ;;  %vm280_vm4 = vcmask 842752   ;;  %vm298_vm5 = vcmask 834560  }
  0x3d   : > { %714 = vmatprep.mubr.msk.f32.mxu1 %vm403_vm0, %v1169_v6  ;;  %894 = vset.pattern.permute.xlu1 %v1018_v8  ;;  %vm316_vm6 = vcmask 654336   ;;  %vm334_vm7 = vcmask 646144   ;;  %vm352_vm8 = vcmask 637952   ;;  %p1282_p9 = scmp.ne.s32.totalorder %s1277_s25, 0  ;;  %s1020_s23 = smov [#allocation6]  }
  0x40   : > { %839 = vrot.lane.b32.xlu1 %v833_v3, %s1012_s9  ;;  %829 = vrot.lane.b32.xlu0 %v828_v5, %s1011_s8  ;;  %s750_s8 = smul.u32 384, %s999_s15  ;;  %s569_s15 = scalar_lea.sflag [#allocation5], %s1152_s5 }
  0x44   : > { %849 = vrot.lane.b32.xlu1 %v828_v5, %s1012_s9  ;;  %844 = vrot.lane.b32.xlu0 %v828_v5, %s1010_s6  ;;  %s749_s6 = smul.u32 24, %s1152_s5 }
  0x46   : > { %s200_s9 = scalar_lea.vmem [#allocation6], %s749_s6 }
  0x48   : > { %859 = vrot.lane.b32.xlu1 %v833_v3, %s1013_s24  ;;  %854 = vrot.lane.b32.xlu0 %v833_v3, %s1014_s10 }
  0x4c   : > { %869 = vrot.lane.b32.xlu1 %v828_v5, %s1013_s24  ;;  %864 = vrot.lane.b32.xlu0 %v828_v5, %s1014_s10  ;;  %s585_s24 = sshll.u32 %s200_s9, 4  ;;  %s1223_s24 = int_to_ptr.vmem [resolvable:$true] %s585_s24 }
  0x4d   : > { %s925_s22 = scalar_lea.vmem %s1223_s24, 384 }
  0x4e   : > { %p926_p8 = scmp.ne.s32.totalorder %s1223_s24, %s925_s22 }
  0x50   : > { %879 = vrot.lane.b32.xlu1 %v833_v3, %s1015_s19  ;;  %874 = vrot.lane.b32.xlu0 %v833_v3, %s1016_s21  ;;  %p927_p11 = pnand %p926_p8, %p1282_p9 }
  0x52   : > { %p928_p0 = pneg %p927_p11 }
  0x54   : > { %889 = vrot.lane.b32.xlu1 %v828_v5, %s1015_s19  ;;  %884 = vrot.lane.b32.xlu0 %v828_v5, %s1016_s21  ;;  %s1221_s21 = scalar_lea.hbm %s1273_s3, %s750_s8 }
  0x58   : > { %348 = vrot.lane.b32.xlu1 %v1160_v1, %s1019_s28  ;;  %346 = vrot.lane.b32.xlu0 %v208_v0, %s1019_s28 }
  0x5c   : > { %350 = vrot.lane.b32.xlu1 %v210_v4, %s1019_s28  ;;  %344 = vrot.lane.b32.xlu0 %v1162_v2, %s1019_s28  ;;  %s929_s28 = sshll.u32 %s1020_s23, 4  ;;  %s930_s28 = int_to_ptr.vmem [resolvable:$false] %s929_s28 }
  0x5d   : > { %s931_s29 = scalar_lea.vmem %s930_s28, 768  ;;  %p932_p7 = scmp.lt.s32.totalorder %s1223_s24, %s930_s28 }
  0x5e   : > { %p933_p13 = scmp.lt.s32.totalorder %s931_s29, %s925_s22 }
  0x60   : > { %395 = vperm.xlu0 %893, %v391_v9   ;;  %400 = vperm.xlu1 %894, %v392_v10   ;;  %p934_p3 = por %p933_p13, %p932_p7 }
  0x62   : > { %p935_p6 = pnand %p934_p3, %p928_p0 }
  0xae   : > { %v835_v11 = vpop.permute.xlu1 %834  ;;  %v825_v12 = vpop.permute.xlu0 %824 }
  0xaf   : > { %v827_v13 = vunpack.i.h.bf16 %v825_v12  ;;  %v826_v14 = vunpack.i.l.bf16 %v825_v12  ;;  %v837_v15 = vunpack.i.h.bf16 %v835_v11  ;;  %v836_v16 = vunpack.i.l.bf16 %v835_v11 }
  0xb1   : > { %v228_v17 = vsel %vm226_vm1, %v826_v14, %v827_v13  ;;  %v246_v27 = vsel %vm244_vm2, %v836_v16, %v837_v15 }
  0xb2   : > { %v840_v18 = vpop.permute.xlu1 %839  ;;  %v830_v19 = vpop.permute.xlu0 %829  ;;  %v717_v20 = vpack.c.bf16 %v228_v17, %v208_v0 }
  0xb3   : > { %v842_v21 = vunpack.i.h.bf16 %v840_v18  ;;  %v841_v22 = vunpack.i.l.bf16 %v840_v18  ;;  %v832_v23 = vunpack.i.h.bf16 %v830_v19  ;;  %v831_v24 = vunpack.i.l.bf16 %v830_v19 }
  0xb4   : > { %718 = vmatprep.subr.bf16.mxu0 %v717_v20 }
  0xb5   : > { %v227_v25 = vsel %vm226_vm1, %v831_v24, %v826_v14  ;;  %v229_v26 = vsel %vm226_vm1, %v827_v13, %v832_v23  ;;  %v264_v28 = vsel %vm262_vm3, %v841_v22, %v842_v21 }
  0xb6   : > { %v850_v29 = vpop.permute.xlu1 %849  ;;  %v845_v30 = vpop.permute.xlu0 %844  ;;  %v719_v31 = vpack.c.bf16 %v227_v25, %v1162_v2  ;;  %v733_v32 = vpack.c.bf16 %v229_v26, %v1160_v1  ;;  %v721_v33 = vpack.c.bf16 %v264_v28, %v246_v27 }
  0xb7   : > { %v852_v34 = vunpack.i.h.bf16 %v850_v29  ;;  %v851_v35 = vunpack.i.l.bf16 %v850_v29  ;;  %v847_v36 = vunpack.i.h.bf16 %v845_v30  ;;  %v846_v37 = vunpack.i.l.bf16 %v845_v30 }
  0xb8   : > { %720 = vmatpush1.bf16.msra.mxu0 %v719_v31  ;;  %734 = vmatprep.subr.bf16.mxu1 %v733_v32  ;;  %v363_v31 = vld [vmem:[%s1271_s1 + $0x8] sm:$0xff] }
  0xb9   : > { %722 = vmatprep.subr.bf16.mxu0 %v721_v33  ;;  %736 = vmatpush3.bf16.msra.mxu1 %v733_v32  ;;  %v245_v38 = vsel %vm244_vm2, %v846_v37, %v836_v16  ;;  %v263_v39 = vsel %vm262_vm3, %v851_v35, %v841_v22  ;;  %v247_v40 = vsel %vm244_vm2, %v837_v15, %v847_v36 }
  0xba   : > { %v860_v41 = vpop.permute.xlu1 %859  ;;  %v855_v42 = vpop.permute.xlu0 %854  ;;  %v723_v43 = vpack.c.bf16 %v263_v39, %v245_v38  ;;  %v265_v44 = vsel %vm262_vm3, %v842_v21, %v852_v34 }
  0xbb   : > { %v862_v45 = vunpack.i.h.bf16 %v860_v41  ;;  %v861_v46 = vunpack.i.l.bf16 %v860_v41  ;;  %v857_v47 = vunpack.i.h.bf16 %v855_v42  ;;  %v856_v48 = vunpack.i.l.bf16 %v855_v42 }
  0xbc   : > { %724 = vmatpush1.bf16.msra.mxu0 %v723_v43  ;;  %v737_v49 = vpack.c.bf16 %v265_v44, %v247_v40 }
  0xbd   : > { %v282_v50 = vsel %vm280_vm4, %v856_v48, %v857_v47  ;;  %v300_v51 = vsel %vm298_vm5, %v861_v46, %v862_v45 }
  0xbe   : > { %738 = vmatprep.subr.bf16.mxu1 %v737_v49  ;;  %v870_v52 = vpop.permute.xlu1 %869  ;;  %v865_v53 = vpop.permute.xlu0 %864  ;;  %v725_v54 = vpack.c.bf16 %v300_v51, %v282_v50 }
  0xbf   : > { %740 = vmatpush3.bf16.msra.mxu1 %v737_v49  ;;  %v872_v55 = vunpack.i.h.bf16 %v870_v52  ;;  %v871_v56 = vunpack.i.l.bf16 %v870_v52  ;;  %v867_v57 = vunpack.i.h.bf16 %v865_v53  ;;  %v866_v58 = vunpack.i.l.bf16 %v865_v53 }
  0xc0   : > { %726 = vmatprep.subr.bf16.mxu0 %v725_v54 }
  0xc1   : > { %v281_v59 = vsel %vm280_vm4, %v866_v58, %v856_v48  ;;  %v299_v60 = vsel %vm298_vm5, %v871_v56, %v861_v46  ;;  %v283_v61 = vsel %vm280_vm4, %v857_v47, %v867_v57  ;;  %v301_v62 = vsel %vm298_vm5, %v862_v45, %v872_v55 }
  0xc2   : > { %v880_v63 = vpop.permute.xlu1 %879  ;;  %v875_v0 = vpop.permute.xlu0 %874  ;;  %v727_v1 = vpack.c.bf16 %v299_v60, %v281_v59  ;;  %v741_v2 = vpack.c.bf16 %v301_v62, %v283_v61 }
  0xc3   : > { %v882_v3 = vunpack.i.h.bf16 %v880_v63  ;;  %v881_v4 = vunpack.i.l.bf16 %v880_v63  ;;  %v877_v5 = vunpack.i.h.bf16 %v875_v0  ;;  %v876_v8 = vunpack.i.l.bf16 %v875_v0 }
  0xc4   : > { %728 = vmatpush1.bf16.msra.mxu0 %v727_v1  ;;  %742 = vmatprep.subr.bf16.mxu1 %v741_v2 }
  0xc5   : > { %744 = vmatpush3.bf16.msra.mxu1 %v741_v2  ;;  %v318_v9 = vsel %vm316_vm6, %v876_v8, %v877_v5  ;;  %v336_v10 = vsel %vm334_vm7, %v881_v4, %v882_v3 }
  0xc6   : > { %v890_v11 = vpop.permute.xlu1 %889  ;;  %v885_v12 = vpop.permute.xlu0 %884  ;;  %v729_v13 = vpack.c.bf16 %v336_v10, %v318_v9 }
  0xc7   : > { %v892_v14 = vunpack.i.h.bf16 %v890_v11  ;;  %v891_v15 = vunpack.i.l.bf16 %v890_v11  ;;  %v887_v16 = vunpack.i.h.bf16 %v885_v12  ;;  %v886_v17 = vunpack.i.l.bf16 %v885_v12 }
  0xc8   : > { %730 = vmatprep.subr.bf16.mxu0 %v729_v13 }
  0xc9   : > { %v317_v18 = vsel %vm316_vm6, %v886_v17, %v876_v8  ;;  %v335_v19 = vsel %vm334_vm7, %v891_v15, %v881_v4  ;;  %v319_v20 = vsel %vm316_vm6, %v877_v5, %v887_v16  ;;  %v337_v21 = vsel %vm334_vm7, %v882_v3, %v892_v14 }
  0xca   : > { %v349_v22 = vpop.permute.xlu1 %348  ;;  %v347_v23 = vpop.permute.xlu0 %346  ;;  %v731_v24 = vpack.c.bf16 %v335_v19, %v317_v18  ;;  %v745_v25 = vpack.c.bf16 %v337_v21, %v319_v20 }
  0xcb   : > { %v354_v26 = vsel %vm352_vm8, %v347_v23, %v349_v22 }
  0xcc   : > { %732 = vmatpush1.bf16.msra.mxu0 %v731_v24  ;;  %746 = vmatprep.subr.bf16.mxu1 %v745_v25 }
  0xcd   : > { %426 = vmatprep.subr.mxu0 %v354_v26  ;;  %748 = vmatpush3.bf16.msra.mxu1 %v745_v25 }
  0xce   : > { %v351_v27 = vpop.permute.xlu1 %350  ;;  %v345_v28 = vpop.permute.xlu0 %344 }
  0xcf   : > { %v353_v29 = vsel %vm352_vm8, %v345_v28, %v347_v23  ;;  %v355_v30 = vsel %vm352_vm8, %v349_v22, %v351_v27 }
  0xd0   : > { %427 = vmatpush1.msra.mxu0 %v353_v29  ;;  %712 = vmatprep.subr.mxu1 %v355_v30 }
  0xd1   : > { %677 = vmatmul.mubr.msk.f32.vlgmr.msra.gmra.mrb[0].mxu0 %vm403_vm0, %v1169_v6  ;;  %713 = vmatpush3.msra.mxu1 %v355_v30 }
  0xd2   : > { %480 = vmatprep.mubr.f32.mxu0 %v1017_v7  ;;  %715 = vmatmul.mubr.msk.f32.vlgmr.msra.gmra.mrb[0].mxu1 %vm403_vm0, %v363_v31 }
  0xd5   : > { %678 = vmatmul.mubr.msk.f32.gmra.mrb[2].mxu0 %vm403_vm0, %v363_v31 }
  0xdf   : > { %v401_v32 = vpop.permute.xlu1 %400  ;;  %v396_v36 = vpop.permute.xlu0 %395 }
 0x1a4   : > { %v476_v33 = vpop.f32.mrb[0].mxu0 }
 0x1a5   : > { %v478_v34 = vpop.f32.mrb[1].mxu0  ;;  %v716_v35 = vpop.f32.mrb[0].mxu1  ;;  %v477_v6 = vadd.f32 %v476_v33, %v396_v36 }
 0x1a6   : > { %v559_v37 = vadd.f32 %v716_v35, %v401_v32  ;;  %v553_v38 = vpop.f32.mrb[1].mxu1  ;;  %v479_v43 = vadd.f32 %v478_v34, %v396_v36 }
 0x1a7   : > { %v554_v39 = vadd.f32 %v553_v38, %v396_v36 }
 0x1a8   : > { %v482_v40 = vpop.f32.mrb[2].mxu0 }
 0x1a9   : > { %v483_v41 = vadd.f32 %v482_v40, %v401_v32  ;;  %v564_v42 = vmax.f32 %v554_v39, %v559_v37  ;;  %v484_v7 = vpop.f32.mrb[3].mxu0 }
 0x1aa   : > { %v485_v44 = vadd.f32 %v484_v7, %v401_v32 }
 0x1ab   : > { %v562_v45 = vmax.f32 %v477_v6, %v483_v41  ;;  %567 = vst [vmem:[%s200_s9 + $0x10] sm:$0xff] %v564_v42 }
 0x1ac   : > { %v563_v46 = vmax.f32 %v479_v43, %v485_v44 }
 0x1ad   : > { %565 = vst [vmem:[%s200_s9] sm:$0xff] %v562_v45 }
 0x1ae   : > { %566 = vst [vmem:[%s200_s9 + $0x8] sm:$0xff] %v563_v46 }
 0x1af   : > { %938 = shalt.err (!%p935_p6)
}
 0x1b0   : > { %s939_s5 = scalar_lea.hbm %s1221_s21, 384  ;;  %s943_s7 = scalar_lea.hbm %s1273_s3, 768 }
 0x1b1   : > { %p940_p4 = scmp.ne.s32.totalorder %s1221_s21, %s939_s5  ;;  %p944_p1 = scmp.lt.u32.totalorder %s1221_s21, %s1273_s3 }
 0x1b2   : > { %p945_p2 = scmp.lt.u32.totalorder %s943_s7, %s939_s5  ;;  %p947_p8 = scmp.lt.u32.totalorder %s939_s5, %s1221_s21 }
 0x1b3   : > { %p941_p10 = pnand %p940_p4, %p1282_p9 }
 0x1b4   : > { %p946_p5 = por %p945_p2, %p944_p1 }
 0x1b5   : > { %p942_p12 = pneg %p941_p10 }
 0x1b6   : > { %p948_p11 = por %p947_p8, %p946_p5 }
 0x1b8   : > { %p949_p0 = pnand %p948_p11, %p942_p12 }
 0x1ba   : > { %952 = shalt.err (!%p949_p0)
}
 0x1bb   : > { %753 = dma.vmem_to_hbm [thread:$0]  (%p1282_p9), %s1223_s24, 384, %s1221_s21, %s569_s15  }
 0x1bc PF: > { %s597_s6 = sand.u32 1, %s987_s12   ;;  %p1283_p7 = scmp.ne.s32.totalorder %s1278_s27, 0 }
 0x1bd   : > { %p1284_p13 = scmp.ge.s32.totalorder %s1007_s17, 2  ;;  %s598_s8 = scalar_lea.sflag [#allocation5], %s597_s6 }
 0x1bf   : > { %p760_p3 = pnand %p1284_p13, %p1283_p7 }
 0x1c1   : > { %982 = dma.done.wait (!%p760_p3), %s598_s8, 384  }
 0x1c2   : > { %984 = vsyncadd (!%p760_p3), %s598_s8, 4294966912  ;;  %s19_s17 = sadd.s32 1, %s1007_s17   ;;  %s1285_s12 = smov %s991_s13 }
 0x1c3   : > { %p16_p6 = scmp.ge.s32.totalorder %s19_s17, 4   ;;  %s1286_s13 = smov %s995_s14 }
 0x1c4   : > { %s1287_s14 = smov %s1097_s26  ;;  %s1288_s15 = smov %s1003_s16 }
 0x1c5   : > { %s1289_s16 = smov %s1291_s20  ;;  %18 = sbr.rel (!%p16_p6) target bundleno = 6 (0x6), region = 78 }
 0x1cc   :  { %603 = vsyncpa [#allocation4], 1 }
 0x1cd   :  { %605 = vsyncpa [#allocation4 + $0x1], 1 }
 0x1ce   :  { %606 = vsyncpa [#allocation5], 1 }
 0x1cf   :  { %608 = vsyncpa [#allocation5 + $0x1], 1 }

</bundles_post_ra>
